<compile_context>
chip_gen: v7x
topology: tpu7x:2x2x1
jax: 0.10.0
libtpu: 0.0.40
codegen_flags: <defaults>
</compile_context>

<pallas_src>
import functools

import jax
import jax.numpy as jnp
from jax.experimental import pallas as pl
from jax.experimental.pallas import tpu as pltpu


def student_agent_kernel(x_ref, h0_ref, c0_ref,
                         w1_ref, b1_ref,
                         wih_ref, whh_ref, bl_ref,
                         w3_ref, b3_ref,
                         probs_ref, nh_ref, nc_ref,
                         hs_sc):
    B, T, I = x_ref.shape
    H = h0_ref.shape[1]
    A = w3_ref.shape[1]

    # ---- layer1 (Linear + ReLU) and the hoisted input-side gate projection.
    #      Both biases are folded in here, once, off the serial path. ----
    x = x_ref[...].reshape(B * T, I)
    x2 = jnp.maximum(
        jnp.dot(x, w1_ref[...], preferred_element_type=jnp.float32) + b1_ref[...],
        0.0)                                                       # (B*T, H)
    gx = (jnp.dot(x2, wih_ref[...], preferred_element_type=jnp.float32)
          + bl_ref[...])                                           # (B*T, 4H)
    gx = gx.reshape(B, T, 4 * H)   # batch-major view (row b*T+t -> [b, t]); no transpose

    h = h0_ref[...]                                                # (B, H)
    c = c0_ref[...]

    # ---- layer2: LSTM recurrence, fully unrolled (T static & tiny).
    #      Per step only `h @ w_hh` + elementwise tail is on the dependency chain. ----
    for t in range(T):
        gates = (jnp.dot(h, whh_ref[...], preferred_element_type=jnp.float32)
                 + gx[:, t, :])                                    # (B, 4H)
        sg = jax.nn.sigmoid(gates)      # one full-width EUP pass
        tg = jnp.tanh(gates)            # one full-width EUP pass
        i_g = sg[:, 0 * H:1 * H]
        f_g = sg[:, 1 * H:2 * H]
        g_g = tg[:, 2 * H:3 * H]
        o_g = sg[:, 3 * H:4 * H]
        c = f_g * c + i_g * g_g
        h = o_g * jnp.tanh(c)
        hs_sc[pl.ds(t * B, B), :] = h   # time-major flat rows (row = t*B + b)

    nh_ref[...] = h
    nc_ref[...] = c

    # ---- layer3 (Linear) + softmax over A classes for all B*T rows at once
    #      (time-major flat order; the wrapper does the tiny row reorder). ----
    hs = hs_sc[...]                                                # (T*B, H)
    logits = jnp.dot(hs, w3_ref[...], preferred_element_type=jnp.float32) + b3_ref[...]
    if A == 2:
        # exact 2-class softmax: no cross-lane max/sum reductions, one sigmoid
        p1 = jax.nn.sigmoid(logits[:, 1:2] - logits[:, 0:1])
        probs_ref[...] = jnp.concatenate([1.0 - p1, p1], axis=-1)
    else:
        z = logits - jnp.max(logits, axis=-1, keepdims=True)
        e = jnp.exp(z)
        probs_ref[...] = e / jnp.sum(e, axis=-1, keepdims=True)


def student_agent_forward(x, h, c, params):
    """x: (B, T, I); h, c: (1, B, H) like PyTorch. Returns (probs, new_h, new_c)."""
    B, T, _ = x.shape
    H = params["w1"].shape[1]
    A = params["w3"].shape[1]
    h0 = h[0]
    c0 = c[0]

    vmem = functools.partial(pl.BlockSpec, memory_space=pltpu.MemorySpace.VMEM)
    out_shapes = (
        jax.ShapeDtypeStruct((T * B, A), jnp.float32),   # probs, time-major rows
        jax.ShapeDtypeStruct((B, H), jnp.float32),       # new h
        jax.ShapeDtypeStruct((B, H), jnp.float32),       # new c
    )
    probs_tm, nh, nc = pl.pallas_call(
        student_agent_kernel,
        out_shape=out_shapes,
        in_specs=[vmem()] * 10,
        out_specs=(vmem(), vmem(), vmem()),
        scratch_shapes=[
            pltpu.VMEM((T * B, H), jnp.float32),         # LSTM outputs, time-major flat
        ],
    )(x, h0, c0,
      params["w1"], params["b1"],
      params["w_ih"], params["w_hh"], params["b_l"],
      params["w3"], params["b3"])

    # Tiny layout fix-up outside the latency-critical kernel:
    # (t*B + b) row order -> (b*T + t) row order, matching out.reshape(-1, 32).
    probs = probs_tm.reshape(T, B, A).transpose(1, 0, 2).reshape(B * T, A)
    return probs, nh[None], nc[None]


def init_params(key, inp=3, hidden=32, actions=2):
    ks = jax.random.split(key, 8)

    def u(k, shape, bound):
        return jax.random.uniform(k, shape, jnp.float32, -bound, bound)

    b_lin = 1.0 / (inp ** 0.5)
    b_rnn = 1.0 / (hidden ** 0.5)
    return {
        "w1":   u(ks[0], (inp, hidden), b_lin),
        "b1":   u(ks[1], (1, hidden), b_lin),
        "w_ih": u(ks[2], (hidden, 4 * hidden), b_rnn),
        "w_hh": u(ks[3], (hidden, 4 * hidden), b_rnn),
        "b_l":  u(ks[4], (1, 4 * hidden), b_rnn) + u(ks[5], (1, 4 * hidden), b_rnn),
        "w3":   u(ks[6], (hidden, actions), b_rnn),
        "b3":   u(ks[7], (1, actions), b_rnn),
    }


def reference_forward(x, h, c, p):
    """Pure-JAX reference mirroring the PyTorch forward."""
    B, T, I = x.shape
    H = p["w1"].shape[1]
    pre = jnp.maximum(x.reshape(B * T, I) @ p["w1"] + p["b1"], 0.0).reshape(B, T, H)
    h_t, c_t = h[0], c[0]
    hs = []
    for t in range(T):
        gates = pre[:, t] @ p["w_ih"] + h_t @ p["w_hh"] + p["b_l"]
        i_g = jax.nn.sigmoid(gates[:, :H])
        f_g = jax.nn.sigmoid(gates[:, H:2 * H])
        g_g = jnp.tanh(gates[:, 2 * H:3 * H])
        o_g = jax.nn.sigmoid(gates[:, 3 * H:])
        c_t = f_g * c_t + i_g * g_g
        h_t = o_g * jnp.tanh(c_t)
        hs.append(h_t)
    hs = jnp.stack(hs, axis=1).reshape(B * T, H)
    logits = hs @ p["w3"] + p["b3"]
    return jax.nn.softmax(logits, axis=-1), h_t[None], c_t[None]


if __name__ == "__main__":
    key = jax.random.PRNGKey(0)
    kp, kx = jax.random.split(key)

    B, T, I, H = 2, 8, 3, 32
    A = 2  # CartPole-v1 action_space.n

    params = init_params(kp, I, H, A)
    x = jax.random.normal(kx, (B, T, I), jnp.float32)
    h0 = jnp.zeros((1, B, H), jnp.float32)   # init_hidden_state(training=True)
    c0 = jnp.zeros((1, B, H), jnp.float32)

    probs, new_h, new_c = student_agent_forward(x, h0, c0, params)
    jax.block_until_ready((probs, new_h, new_c))

    ref_p, ref_h, ref_c = reference_forward(x, h0, c0, params)
    assert probs.shape == (B * T, A) and new_h.shape == (1, B, H) and new_c.shape == (1, B, H)
    assert jnp.allclose(probs, ref_p, atol=1e-5), "probs mismatch vs reference"
    assert jnp.allclose(new_h, ref_h, atol=1e-5), "new_h mismatch vs reference"
    assert jnp.allclose(new_c, ref_c, atol=1e-5), "new_c mismatch vs reference"

    print("KERNEL_OK")
</pallas_src>

<mosaic_0001>
module attributes {stable_mosaic.version = 11 : i64} {
  func.func @student_agent_kernel(%arg0: memref<2x8x3xf32, #tpu.memory_space<vmem>>, %arg1: memref<2x32xf32, #tpu.memory_space<vmem>>, %arg2: memref<2x32xf32, #tpu.memory_space<vmem>>, %arg3: memref<3x32xf32, #tpu.memory_space<vmem>>, %arg4: memref<1x32xf32, #tpu.memory_space<vmem>>, %arg5: memref<32x128xf32, #tpu.memory_space<vmem>>, %arg6: memref<32x128xf32, #tpu.memory_space<vmem>>, %arg7: memref<1x128xf32, #tpu.memory_space<vmem>>, %arg8: memref<32x2xf32, #tpu.memory_space<vmem>>, %arg9: memref<1x2xf32, #tpu.memory_space<vmem>>, %arg10: memref<16x2xf32, #tpu.memory_space<vmem>>, %arg11: memref<2x32xf32, #tpu.memory_space<vmem>>, %arg12: memref<2x32xf32, #tpu.memory_space<vmem>>, %arg13: memref<16x32xf32, #tpu.memory_space<vmem>>) attributes {dimension_semantics = [], scalar_prefetch = 0 : i64, scratch_operands = 1 : i64, tpu.core_type = #tpu.core_type<tc>} {
    %c0 = arith.constant 0 : index
    %c0_0 = arith.constant 0 : index
    %c0_1 = arith.constant 0 : index
    %0 = vector.load %arg0[%c0, %c0_0, %c0_1] : memref<2x8x3xf32, #tpu.memory_space<vmem>>, vector<2x8x3xf32>
    %1 = vector.shape_cast %0 : vector<2x8x3xf32> to vector<16x3xf32>
    %c0_2 = arith.constant 0 : index
    %c0_3 = arith.constant 0 : index
    %2 = vector.load %arg3[%c0_2, %c0_3] : memref<3x32xf32, #tpu.memory_space<vmem>>, vector<3x32xf32>
    %cst = arith.constant dense<0.000000e+00> : vector<16x32xf32>
    %3 = tpu.matmul %1, %2, %cst {dimension_numbers = #tpu.dot_dimension_numbers<[1], [0], [0], [1], [0, 0, 1, 1], [], []>} : vector<16x3xf32>, vector<3x32xf32>, vector<16x32xf32> -> vector<16x32xf32>
    %c0_4 = arith.constant 0 : index
    %c0_5 = arith.constant 0 : index
    %4 = vector.load %arg4[%c0_4, %c0_5] : memref<1x32xf32, #tpu.memory_space<vmem>>, vector<1x32xf32>
    %5 = vector.broadcast %4 : vector<1x32xf32> to vector<16x32xf32>
    %6 = arith.addf %3, %5 : vector<16x32xf32>
    %cst_6 = arith.constant 0.000000e+00 : f32
    %7 = vector.broadcast %cst_6 : f32 to vector<16x32xf32>
    %8 = arith.maximumf %6, %7 : vector<16x32xf32>
    %c0_7 = arith.constant 0 : index
    %c0_8 = arith.constant 0 : index
    %9 = vector.load %arg5[%c0_7, %c0_8] : memref<32x128xf32, #tpu.memory_space<vmem>>, vector<32x128xf32>
    %cst_9 = arith.constant dense<0.000000e+00> : vector<16x128xf32>
    %10 = tpu.matmul %8, %9, %cst_9 {dimension_numbers = #tpu.dot_dimension_numbers<[1], [0], [0], [1], [0, 0, 1, 1], [], []>} : vector<16x32xf32>, vector<32x128xf32>, vector<16x128xf32> -> vector<16x128xf32>
    %c0_10 = arith.constant 0 : index
    %c0_11 = arith.constant 0 : index
    %11 = vector.load %arg7[%c0_10, %c0_11] : memref<1x128xf32, #tpu.memory_space<vmem>>, vector<1x128xf32>
    %12 = vector.broadcast %11 : vector<1x128xf32> to vector<16x128xf32>
    %13 = arith.addf %10, %12 : vector<16x128xf32>
    %14 = vector.shape_cast %13 : vector<16x128xf32> to vector<2x8x128xf32>
    %c0_12 = arith.constant 0 : index
    %c0_13 = arith.constant 0 : index
    %15 = vector.load %arg1[%c0_12, %c0_13] : memref<2x32xf32, #tpu.memory_space<vmem>>, vector<2x32xf32>
    %c0_14 = arith.constant 0 : index
    %c0_15 = arith.constant 0 : index
    %16 = vector.load %arg2[%c0_14, %c0_15] : memref<2x32xf32, #tpu.memory_space<vmem>>, vector<2x32xf32>
    %c0_16 = arith.constant 0 : index
    %c0_17 = arith.constant 0 : index
    %17 = vector.load %arg6[%c0_16, %c0_17] : memref<32x128xf32, #tpu.memory_space<vmem>>, vector<32x128xf32>
    %cst_18 = arith.constant dense<0.000000e+00> : vector<2x128xf32>
    %18 = tpu.matmul %15, %17, %cst_18 {dimension_numbers = #tpu.dot_dimension_numbers<[1], [0], [0], [1], [0, 0, 1, 1], [], []>} : vector<2x32xf32>, vector<32x128xf32>, vector<2x128xf32> -> vector<2x128xf32>
    %19 = vector.extract_strided_slice %14 {offsets = [0, 0, 0], sizes = [2, 1, 128], strides = [1, 1, 1]} : vector<2x8x128xf32> to vector<2x1x128xf32>
    %20 = vector.shape_cast %19 : vector<2x1x128xf32> to vector<2x128xf32>
    %21 = arith.addf %18, %20 : vector<2x128xf32>
    %22 = arith.negf %21 : vector<2x128xf32>
    %23 = math.exp %22 : vector<2x128xf32>
    %cst_19 = arith.constant 1.000000e+00 : f32
    %24 = vector.broadcast %cst_19 : f32 to vector<2x128xf32>
    %25 = arith.addf %24, %23 : vector<2x128xf32>
    %26 = arith.divf %24, %25 : vector<2x128xf32>
    %27 = math.tanh %21 : vector<2x128xf32>
    %28 = vector.extract_strided_slice %26 {offsets = [0, 0], sizes = [2, 32], strides = [1, 1]} : vector<2x128xf32> to vector<2x32xf32>
    %29 = vector.extract_strided_slice %26 {offsets = [0, 32], sizes = [2, 32], strides = [1, 1]} : vector<2x128xf32> to vector<2x32xf32>
    %30 = vector.extract_strided_slice %27 {offsets = [0, 64], sizes = [2, 32], strides = [1, 1]} : vector<2x128xf32> to vector<2x32xf32>
    %31 = vector.extract_strided_slice %26 {offsets = [0, 96], sizes = [2, 32], strides = [1, 1]} : vector<2x128xf32> to vector<2x32xf32>
    %32 = arith.mulf %29, %16 : vector<2x32xf32>
    %33 = arith.mulf %28, %30 : vector<2x32xf32>
    %34 = arith.addf %32, %33 : vector<2x32xf32>
    %35 = math.tanh %34 : vector<2x32xf32>
    %36 = arith.mulf %31, %35 : vector<2x32xf32>
    %c0_20 = arith.constant 0 : index
    %c0_21 = arith.constant 0 : index
    %37 = vector.load %arg13[%c0_20, %c0_21] : memref<16x32xf32, #tpu.memory_space<vmem>>, vector<2x32xf32>
    tpu.vector_store %arg13[%c0_20, %c0_21], %36 {strides = array<i32>} : memref<16x32xf32, #tpu.memory_space<vmem>>, vector<2x32xf32>,
    %c0_22 = arith.constant 0 : index
    %c0_23 = arith.constant 0 : index
    %38 = vector.load %arg6[%c0_22, %c0_23] : memref<32x128xf32, #tpu.memory_space<vmem>>, vector<32x128xf32>
    %cst_24 = arith.constant dense<0.000000e+00> : vector<2x128xf32>
    %39 = tpu.matmul %36, %38, %cst_24 {dimension_numbers = #tpu.dot_dimension_numbers<[1], [0], [0], [1], [0, 0, 1, 1], [], []>} : vector<2x32xf32>, vector<32x128xf32>, vector<2x128xf32> -> vector<2x128xf32>
    %40 = vector.extract_strided_slice %14 {offsets = [0, 1, 0], sizes = [2, 1, 128], strides = [1, 1, 1]} : vector<2x8x128xf32> to vector<2x1x128xf32>
    %41 = vector.shape_cast %40 : vector<2x1x128xf32> to vector<2x128xf32>
    %42 = arith.addf %39, %41 : vector<2x128xf32>
    %43 = arith.negf %42 : vector<2x128xf32>
    %44 = math.exp %43 : vector<2x128xf32>
    %cst_25 = arith.constant 1.000000e+00 : f32
    %45 = vector.broadcast %cst_25 : f32 to vector<2x128xf32>
    %46 = arith.addf %45, %44 : vector<2x128xf32>
    %47 = arith.divf %45, %46 : vector<2x128xf32>
    %48 = math.tanh %42 : vector<2x128xf32>
    %49 = vector.extract_strided_slice %47 {offsets = [0, 0], sizes = [2, 32], strides = [1, 1]} : vector<2x128xf32> to vector<2x32xf32>
    %50 = vector.extract_strided_slice %47 {offsets = [0, 32], sizes = [2, 32], strides = [1, 1]} : vector<2x128xf32> to vector<2x32xf32>
    %51 = vector.extract_strided_slice %48 {offsets = [0, 64], sizes = [2, 32], strides = [1, 1]} : vector<2x128xf32> to vector<2x32xf32>
    %52 = vector.extract_strided_slice %47 {offsets = [0, 96], sizes = [2, 32], strides = [1, 1]} : vector<2x128xf32> to vector<2x32xf32>
    %53 = arith.mulf %50, %34 : vector<2x32xf32>
    %54 = arith.mulf %49, %51 : vector<2x32xf32>
    %55 = arith.addf %53, %54 : vector<2x32xf32>
    %56 = math.tanh %55 : vector<2x32xf32>
    %57 = arith.mulf %52, %56 : vector<2x32xf32>
    %c2 = arith.constant 2 : index
    %c0_26 = arith.constant 0 : index
    %58 = vector.load %arg13[%c2, %c0_26] : memref<16x32xf32, #tpu.memory_space<vmem>>, vector<2x32xf32>
    tpu.vector_store %arg13[%c2, %c0_26], %57 {strides = array<i32>} : memref<16x32xf32, #tpu.memory_space<vmem>>, vector<2x32xf32>,
    %c0_27 = arith.constant 0 : index
    %c0_28 = arith.constant 0 : index
    %59 = vector.load %arg6[%c0_27, %c0_28] : memref<32x128xf32, #tpu.memory_space<vmem>>, vector<32x128xf32>
    %cst_29 = arith.constant dense<0.000000e+00> : vector<2x128xf32>
    %60 = tpu.matmul %57, %59, %cst_29 {dimension_numbers = #tpu.dot_dimension_numbers<[1], [0], [0], [1], [0, 0, 1, 1], [], []>} : vector<2x32xf32>, vector<32x128xf32>, vector<2x128xf32> -> vector<2x128xf32>
    %61 = vector.extract_strided_slice %14 {offsets = [0, 2, 0], sizes = [2, 1, 128], strides = [1, 1, 1]} : vector<2x8x128xf32> to vector<2x1x128xf32>
    %62 = vector.shape_cast %61 : vector<2x1x128xf32> to vector<2x128xf32>
    %63 = arith.addf %60, %62 : vector<2x128xf32>
    %64 = arith.negf %63 : vector<2x128xf32>
    %65 = math.exp %64 : vector<2x128xf32>
    %cst_30 = arith.constant 1.000000e+00 : f32
    %66 = vector.broadcast %cst_30 : f32 to vector<2x128xf32>
    %67 = arith.addf %66, %65 : vector<2x128xf32>
    %68 = arith.divf %66, %67 : vector<2x128xf32>
    %69 = math.tanh %63 : vector<2x128xf32>
    %70 = vector.extract_strided_slice %68 {offsets = [0, 0], sizes = [2, 32], strides = [1, 1]} : vector<2x128xf32> to vector<2x32xf32>
    %71 = vector.extract_strided_slice %68 {offsets = [0, 32], sizes = [2, 32], strides = [1, 1]} : vector<2x128xf32> to vector<2x32xf32>
    %72 = vector.extract_strided_slice %69 {offsets = [0, 64], sizes = [2, 32], strides = [1, 1]} : vector<2x128xf32> to vector<2x32xf32>
    %73 = vector.extract_strided_slice %68 {offsets = [0, 96], sizes = [2, 32], strides = [1, 1]} : vector<2x128xf32> to vector<2x32xf32>
    %74 = arith.mulf %71, %55 : vector<2x32xf32>
    %75 = arith.mulf %70, %72 : vector<2x32xf32>
    %76 = arith.addf %74, %75 : vector<2x32xf32>
    %77 = math.tanh %76 : vector<2x32xf32>
    %78 = arith.mulf %73, %77 : vector<2x32xf32>
    %c4 = arith.constant 4 : index
    %c0_31 = arith.constant 0 : index
    %79 = vector.load %arg13[%c4, %c0_31] : memref<16x32xf32, #tpu.memory_space<vmem>>, vector<2x32xf32>
    tpu.vector_store %arg13[%c4, %c0_31], %78 {strides = array<i32>} : memref<16x32xf32, #tpu.memory_space<vmem>>, vector<2x32xf32>,
    %c0_32 = arith.constant 0 : index
    %c0_33 = arith.constant 0 : index
    %80 = vector.load %arg6[%c0_32, %c0_33] : memref<32x128xf32, #tpu.memory_space<vmem>>, vector<32x128xf32>
    %cst_34 = arith.constant dense<0.000000e+00> : vector<2x128xf32>
    %81 = tpu.matmul %78, %80, %cst_34 {dimension_numbers = #tpu.dot_dimension_numbers<[1], [0], [0], [1], [0, 0, 1, 1], [], []>} : vector<2x32xf32>, vector<32x128xf32>, vector<2x128xf32> -> vector<2x128xf32>
    %82 = vector.extract_strided_slice %14 {offsets = [0, 3, 0], sizes = [2, 1, 128], strides = [1, 1, 1]} : vector<2x8x128xf32> to vector<2x1x128xf32>
    %83 = vector.shape_cast %82 : vector<2x1x128xf32> to vector<2x128xf32>
    %84 = arith.addf %81, %83 : vector<2x128xf32>
    %85 = arith.negf %84 : vector<2x128xf32>
    %86 = math.exp %85 : vector<2x128xf32>
    %cst_35 = arith.constant 1.000000e+00 : f32
    %87 = vector.broadcast %cst_35 : f32 to vector<2x128xf32>
    %88 = arith.addf %87, %86 : vector<2x128xf32>
    %89 = arith.divf %87, %88 : vector<2x128xf32>
    %90 = math.tanh %84 : vector<2x128xf32>
    %91 = vector.extract_strided_slice %89 {offsets = [0, 0], sizes = [2, 32], strides = [1, 1]} : vector<2x128xf32> to vector<2x32xf32>
    %92 = vector.extract_strided_slice %89 {offsets = [0, 32], sizes = [2, 32], strides = [1, 1]} : vector<2x128xf32> to vector<2x32xf32>
    %93 = vector.extract_strided_slice %90 {offsets = [0, 64], sizes = [2, 32], strides = [1, 1]} : vector<2x128xf32> to vector<2x32xf32>
    %94 = vector.extract_strided_slice %89 {offsets = [0, 96], sizes = [2, 32], strides = [1, 1]} : vector<2x128xf32> to vector<2x32xf32>
    %95 = arith.mulf %92, %76 : vector<2x32xf32>
    %96 = arith.mulf %91, %93 : vector<2x32xf32>
    %97 = arith.addf %95, %96 : vector<2x32xf32>
    %98 = math.tanh %97 : vector<2x32xf32>
    %99 = arith.mulf %94, %98 : vector<2x32xf32>
    %c6 = arith.constant 6 : index
    %c0_36 = arith.constant 0 : index
    %100 = vector.load %arg13[%c6, %c0_36] : memref<16x32xf32, #tpu.memory_space<vmem>>, vector<2x32xf32>
    tpu.vector_store %arg13[%c6, %c0_36], %99 {strides = array<i32>} : memref<16x32xf32, #tpu.memory_space<vmem>>, vector<2x32xf32>,
    %c0_37 = arith.constant 0 : index
    %c0_38 = arith.constant 0 : index
    %101 = vector.load %arg6[%c0_37, %c0_38] : memref<32x128xf32, #tpu.memory_space<vmem>>, vector<32x128xf32>
    %cst_39 = arith.constant dense<0.000000e+00> : vector<2x128xf32>
    %102 = tpu.matmul %99, %101, %cst_39 {dimension_numbers = #tpu.dot_dimension_numbers<[1], [0], [0], [1], [0, 0, 1, 1], [], []>} : vector<2x32xf32>, vector<32x128xf32>, vector<2x128xf32> -> vector<2x128xf32>
    %103 = vector.extract_strided_slice %14 {offsets = [0, 4, 0], sizes = [2, 1, 128], strides = [1, 1, 1]} : vector<2x8x128xf32> to vector<2x1x128xf32>
    %104 = vector.shape_cast %103 : vector<2x1x128xf32> to vector<2x128xf32>
    %105 = arith.addf %102, %104 : vector<2x128xf32>
    %106 = arith.negf %105 : vector<2x128xf32>
    %107 = math.exp %106 : vector<2x128xf32>
    %cst_40 = arith.constant 1.000000e+00 : f32
    %108 = vector.broadcast %cst_40 : f32 to vector<2x128xf32>
    %109 = arith.addf %108, %107 : vector<2x128xf32>
    %110 = arith.divf %108, %109 : vector<2x128xf32>
    %111 = math.tanh %105 : vector<2x128xf32>
    %112 = vector.extract_strided_slice %110 {offsets = [0, 0], sizes = [2, 32], strides = [1, 1]} : vector<2x128xf32> to vector<2x32xf32>
    %113 = vector.extract_strided_slice %110 {offsets = [0, 32], sizes = [2, 32], strides = [1, 1]} : vector<2x128xf32> to vector<2x32xf32>
    %114 = vector.extract_strided_slice %111 {offsets = [0, 64], sizes = [2, 32], strides = [1, 1]} : vector<2x128xf32> to vector<2x32xf32>
    %115 = vector.extract_strided_slice %110 {offsets = [0, 96], sizes = [2, 32], strides = [1, 1]} : vector<2x128xf32> to vector<2x32xf32>
    %116 = arith.mulf %113, %97 : vector<2x32xf32>
    %117 = arith.mulf %112, %114 : vector<2x32xf32>
    %118 = arith.addf %116, %117 : vector<2x32xf32>
    %119 = math.tanh %118 : vector<2x32xf32>
    %120 = arith.mulf %115, %119 : vector<2x32xf32>
    %c8 = arith.constant 8 : index
    %c0_41 = arith.constant 0 : index
    %121 = vector.load %arg13[%c8, %c0_41] : memref<16x32xf32, #tpu.memory_space<vmem>>, vector<2x32xf32>
    tpu.vector_store %arg13[%c8, %c0_41], %120 {strides = array<i32>} : memref<16x32xf32, #tpu.memory_space<vmem>>, vector<2x32xf32>,
    %c0_42 = arith.constant 0 : index
    %c0_43 = arith.constant 0 : index
    %122 = vector.load %arg6[%c0_42, %c0_43] : memref<32x128xf32, #tpu.memory_space<vmem>>, vector<32x128xf32>
    %cst_44 = arith.constant dense<0.000000e+00> : vector<2x128xf32>
    %123 = tpu.matmul %120, %122, %cst_44 {dimension_numbers = #tpu.dot_dimension_numbers<[1], [0], [0], [1], [0, 0, 1, 1], [], []>} : vector<2x32xf32>, vector<32x128xf32>, vector<2x128xf32> -> vector<2x128xf32>
    %124 = vector.extract_strided_slice %14 {offsets = [0, 5, 0], sizes = [2, 1, 128], strides = [1, 1, 1]} : vector<2x8x128xf32> to vector<2x1x128xf32>
    %125 = vector.shape_cast %124 : vector<2x1x128xf32> to vector<2x128xf32>
    %126 = arith.addf %123, %125 : vector<2x128xf32>
    %127 = arith.negf %126 : vector<2x128xf32>
    %128 = math.exp %127 : vector<2x128xf32>
    %cst_45 = arith.constant 1.000000e+00 : f32
    %129 = vector.broadcast %cst_45 : f32 to vector<2x128xf32>
    %130 = arith.addf %129, %128 : vector<2x128xf32>
    %131 = arith.divf %129, %130 : vector<2x128xf32>
    %132 = math.tanh %126 : vector<2x128xf32>
    %133 = vector.extract_strided_slice %131 {offsets = [0, 0], sizes = [2, 32], strides = [1, 1]} : vector<2x128xf32> to vector<2x32xf32>
    %134 = vector.extract_strided_slice %131 {offsets = [0, 32], sizes = [2, 32], strides = [1, 1]} : vector<2x128xf32> to vector<2x32xf32>
    %135 = vector.extract_strided_slice %132 {offsets = [0, 64], sizes = [2, 32], strides = [1, 1]} : vector<2x128xf32> to vector<2x32xf32>
    %136 = vector.extract_strided_slice %131 {offsets = [0, 96], sizes = [2, 32], strides = [1, 1]} : vector<2x128xf32> to vector<2x32xf32>
    %137 = arith.mulf %134, %118 : vector<2x32xf32>
    %138 = arith.mulf %133, %135 : vector<2x32xf32>
    %139 = arith.addf %137, %138 : vector<2x32xf32>
    %140 = math.tanh %139 : vector<2x32xf32>
    %141 = arith.mulf %136, %140 : vector<2x32xf32>
    %c10 = arith.constant 10 : index
    %c0_46 = arith.constant 0 : index
    %142 = vector.load %arg13[%c10, %c0_46] : memref<16x32xf32, #tpu.memory_space<vmem>>, vector<2x32xf32>
    tpu.vector_store %arg13[%c10, %c0_46], %141 {strides = array<i32>} : memref<16x32xf32, #tpu.memory_space<vmem>>, vector<2x32xf32>,
    %c0_47 = arith.constant 0 : index
    %c0_48 = arith.constant 0 : index
    %143 = vector.load %arg6[%c0_47, %c0_48] : memref<32x128xf32, #tpu.memory_space<vmem>>, vector<32x128xf32>
    %cst_49 = arith.constant dense<0.000000e+00> : vector<2x128xf32>
    %144 = tpu.matmul %141, %143, %cst_49 {dimension_numbers = #tpu.dot_dimension_numbers<[1], [0], [0], [1], [0, 0, 1, 1], [], []>} : vector<2x32xf32>, vector<32x128xf32>, vector<2x128xf32> -> vector<2x128xf32>
    %145 = vector.extract_strided_slice %14 {offsets = [0, 6, 0], sizes = [2, 1, 128], strides = [1, 1, 1]} : vector<2x8x128xf32> to vector<2x1x128xf32>
    %146 = vector.shape_cast %145 : vector<2x1x128xf32> to vector<2x128xf32>
    %147 = arith.addf %144, %146 : vector<2x128xf32>
    %148 = arith.negf %147 : vector<2x128xf32>
    %149 = math.exp %148 : vector<2x128xf32>
    %cst_50 = arith.constant 1.000000e+00 : f32
    %150 = vector.broadcast %cst_50 : f32 to vector<2x128xf32>
    %151 = arith.addf %150, %149 : vector<2x128xf32>
    %152 = arith.divf %150, %151 : vector<2x128xf32>
    %153 = math.tanh %147 : vector<2x128xf32>
    %154 = vector.extract_strided_slice %152 {offsets = [0, 0], sizes = [2, 32], strides = [1, 1]} : vector<2x128xf32> to vector<2x32xf32>
    %155 = vector.extract_strided_slice %152 {offsets = [0, 32], sizes = [2, 32], strides = [1, 1]} : vector<2x128xf32> to vector<2x32xf32>
    %156 = vector.extract_strided_slice %153 {offsets = [0, 64], sizes = [2, 32], strides = [1, 1]} : vector<2x128xf32> to vector<2x32xf32>
    %157 = vector.extract_strided_slice %152 {offsets = [0, 96], sizes = [2, 32], strides = [1, 1]} : vector<2x128xf32> to vector<2x32xf32>
    %158 = arith.mulf %155, %139 : vector<2x32xf32>
    %159 = arith.mulf %154, %156 : vector<2x32xf32>
    %160 = arith.addf %158, %159 : vector<2x32xf32>
    %161 = math.tanh %160 : vector<2x32xf32>
    %162 = arith.mulf %157, %161 : vector<2x32xf32>
    %c12 = arith.constant 12 : index
    %c0_51 = arith.constant 0 : index
    %163 = vector.load %arg13[%c12, %c0_51] : memref<16x32xf32, #tpu.memory_space<vmem>>, vector<2x32xf32>
    tpu.vector_store %arg13[%c12, %c0_51], %162 {strides = array<i32>} : memref<16x32xf32, #tpu.memory_space<vmem>>, vector<2x32xf32>,
    %c0_52 = arith.constant 0 : index
    %c0_53 = arith.constant 0 : index
    %164 = vector.load %arg6[%c0_52, %c0_53] : memref<32x128xf32, #tpu.memory_space<vmem>>, vector<32x128xf32>
    %cst_54 = arith.constant dense<0.000000e+00> : vector<2x128xf32>
    %165 = tpu.matmul %162, %164, %cst_54 {dimension_numbers = #tpu.dot_dimension_numbers<[1], [0], [0], [1], [0, 0, 1, 1], [], []>} : vector<2x32xf32>, vector<32x128xf32>, vector<2x128xf32> -> vector<2x128xf32>
    %166 = vector.extract_strided_slice %14 {offsets = [0, 7, 0], sizes = [2, 1, 128], strides = [1, 1, 1]} : vector<2x8x128xf32> to vector<2x1x128xf32>
    %167 = vector.shape_cast %166 : vector<2x1x128xf32> to vector<2x128xf32>
    %168 = arith.addf %165, %167 : vector<2x128xf32>
    %169 = arith.negf %168 : vector<2x128xf32>
    %170 = math.exp %169 : vector<2x128xf32>
    %cst_55 = arith.constant 1.000000e+00 : f32
    %171 = vector.broadcast %cst_55 : f32 to vector<2x128xf32>
    %172 = arith.addf %171, %170 : vector<2x128xf32>
    %173 = arith.divf %171, %172 : vector<2x128xf32>
    %174 = math.tanh %168 : vector<2x128xf32>
    %175 = vector.extract_strided_slice %173 {offsets = [0, 0], sizes = [2, 32], strides = [1, 1]} : vector<2x128xf32> to vector<2x32xf32>
    %176 = vector.extract_strided_slice %173 {offsets = [0, 32], sizes = [2, 32], strides = [1, 1]} : vector<2x128xf32> to vector<2x32xf32>
    %177 = vector.extract_strided_slice %174 {offsets = [0, 64], sizes = [2, 32], strides = [1, 1]} : vector<2x128xf32> to vector<2x32xf32>
    %178 = vector.extract_strided_slice %173 {offsets = [0, 96], sizes = [2, 32], strides = [1, 1]} : vector<2x128xf32> to vector<2x32xf32>
    %179 = arith.mulf %176, %160 : vector<2x32xf32>
    %180 = arith.mulf %175, %177 : vector<2x32xf32>
    %181 = arith.addf %179, %180 : vector<2x32xf32>
    %182 = math.tanh %181 : vector<2x32xf32>
    %183 = arith.mulf %178, %182 : vector<2x32xf32>
    %c14 = arith.constant 14 : index
    %c0_56 = arith.constant 0 : index
    %184 = vector.load %arg13[%c14, %c0_56] : memref<16x32xf32, #tpu.memory_space<vmem>>, vector<2x32xf32>
    tpu.vector_store %arg13[%c14, %c0_56], %183 {strides = array<i32>} : memref<16x32xf32, #tpu.memory_space<vmem>>, vector<2x32xf32>,
    %c0_57 = arith.constant 0 : index
    %c0_58 = arith.constant 0 : index
    %185 = vector.load %arg11[%c0_57, %c0_58] : memref<2x32xf32, #tpu.memory_space<vmem>>, vector<2x32xf32>
    tpu.vector_store %arg11[%c0_57, %c0_58], %183 {strides = array<i32>} : memref<2x32xf32, #tpu.memory_space<vmem>>, vector<2x32xf32>,
    %c0_59 = arith.constant 0 : index
    %c0_60 = arith.constant 0 : index
    %186 = vector.load %arg12[%c0_59, %c0_60] : memref<2x32xf32, #tpu.memory_space<vmem>>, vector<2x32xf32>
    tpu.vector_store %arg12[%c0_59, %c0_60], %181 {strides = array<i32>} : memref<2x32xf32, #tpu.memory_space<vmem>>, vector<2x32xf32>,
    %c0_61 = arith.constant 0 : index
    %c0_62 = arith.constant 0 : index
    %187 = vector.load %arg13[%c0_61, %c0_62] : memref<16x32xf32, #tpu.memory_space<vmem>>, vector<16x32xf32>
    %c0_63 = arith.constant 0 : index
    %c0_64 = arith.constant 0 : index
    %188 = vector.load %arg8[%c0_63, %c0_64] : memref<32x2xf32, #tpu.memory_space<vmem>>, vector<32x2xf32>
    %cst_65 = arith.constant dense<0.000000e+00> : vector<16x2xf32>
    %189 = tpu.matmul %187, %188, %cst_65 {dimension_numbers = #tpu.dot_dimension_numbers<[1], [0], [0], [1], [0, 0, 1, 1], [], []>} : vector<16x32xf32>, vector<32x2xf32>, vector<16x2xf32> -> vector<16x2xf32>
    %c0_66 = arith.constant 0 : index
    %c0_67 = arith.constant 0 : index
    %190 = vector.load %arg9[%c0_66, %c0_67] : memref<1x2xf32, #tpu.memory_space<vmem>>, vector<1x2xf32>
    %191 = vector.broadcast %190 : vector<1x2xf32> to vector<16x2xf32>
    %192 = arith.addf %189, %191 : vector<16x2xf32>
    %193 = vector.extract_strided_slice %192 {offsets = [0, 1], sizes = [16, 1], strides = [1, 1]} : vector<16x2xf32> to vector<16x1xf32>
    %194 = vector.extract_strided_slice %192 {offsets = [0, 0], sizes = [16, 1], strides = [1, 1]} : vector<16x2xf32> to vector<16x1xf32>
    %195 = arith.subf %193, %194 : vector<16x1xf32>
    %196 = arith.negf %195 : vector<16x1xf32>
    %197 = math.exp %196 : vector<16x1xf32>
    %cst_68 = arith.constant 1.000000e+00 : f32
    %198 = vector.broadcast %cst_68 : f32 to vector<16x1xf32>
    %199 = arith.addf %198, %197 : vector<16x1xf32>
    %200 = arith.divf %198, %199 : vector<16x1xf32>
    %cst_69 = arith.constant 1.000000e+00 : f32
    %201 = vector.broadcast %cst_69 : f32 to vector<16x1xf32>
    %202 = arith.subf %201, %200 : vector<16x1xf32>
    %203 = tpu.concatenate %202, %200 in 1 : vector<16x1xf32>, vector<16x1xf32> -> vector<16x2xf32>
    %c0_70 = arith.constant 0 : index
    %c0_71 = arith.constant 0 : index
    %204 = vector.load %arg10[%c0_70, %c0_71] : memref<16x2xf32, #tpu.memory_space<vmem>>, vector<16x2xf32>
    tpu.vector_store %arg10[%c0_70, %c0_71], %203 {strides = array<i32>} : memref<16x2xf32, #tpu.memory_space<vmem>>, vector<16x2xf32>,
    return
  }
}

</mosaic_0001>

<bundles_post_ra>
// kernel: tpu_custom_call.1
= control target key start
LH: loop header
LB: loop body
LE: loop exit
PB: predicated region body
PF: predicated region fallthrough
CT: control target
= control target key end

     0   :  { %18 = vsyncpa [#allocation4], 0  ;;  %s2068_s0 = inlined_call_operand.vmem [shape: f32[2,8,3], index: 0, kind: input, shape index: {}]   ;;  %s2069_s1 = inlined_call_operand.vmem [shape: f32[2,32], index: 1, kind: input, shape index: {}]   ;;  %s2070_s2 = inlined_call_operand.hbm [shape: f32[2,32], index: 2, kind: input, shape index: {}]   ;;  %s2071_s3 = inlined_call_operand.hbm [shape: f32[3,32], index: 3, kind: input, shape index: {}]   ;;  %s2072_s4 = inlined_call_operand.vmem [shape: f32[1,32], index: 4, kind: input, shape index: {}]   ;;  %s2073_s5 = inlined_call_operand.vmem [shape: f32[32,128], index: 5, kind: input, shape index: {}]   ;;  %s2074_s6 = inlined_call_operand.vmem [shape: f32[32,128], index: 6, kind: input, shape index: {}]   ;;  %s2075_s7 = inlined_call_operand.vmem [shape: f32[1,128], index: 7, kind: input, shape index: {}]   ;;  %s2076_s8 = inlined_call_operand.vmem [shape: f32[32,2], index: 8, kind: input, shape index: {}]   ;;  %s2077_s9 = inlined_call_operand.vmem [shape: f32[1,2], index: 9, kind: input, shape index: {}]   ;;  %s2078_s10 = inlined_call_operand.vmem [shape: f32[16,2], index: 10, kind: output, shape index: {0}]   ;;  %s2079_s11 = inlined_call_operand.hbm [shape: f32[2,32], index: 11, kind: output, shape index: {1}]   ;;  %s2080_s12 = inlined_call_operand.hbm [shape: f32[2,32], index: 12, kind: output, shape index: {2}]  }
   0x1   :  { %19 = vsyncpa [#allocation7], 0 }
   0x2   :  { %20 = vsyncpa [#allocation5], 0 }
   0x3   :  { %21 = vsyncpa [#allocation10], 0  ;;  %s1750_s21 = smov [#allocation3]   ;;  %s1751_s23 = smov [#allocation6]  }
   0x4   :  { %s32_s22 = sshll.u32 %s1750_s21, 4  ;;  %s42_s24 = sshll.u32 %s1751_s23, 4  ;;  %s33_s22 = int_to_ptr.vmem [resolvable:$true] %s32_s22  ;;  %s43_s24 = int_to_ptr.vmem [resolvable:$true] %s42_s24 }
   0x5   :  { %s1654_s27 = scalar_lea.hbm %s2070_s2, 32 }
   0x6   :  { %p1655_p0 = scmp.ne.s32.totalorder %s2070_s2, %s1654_s27  ;;  %p1658_p1 = scmp.lt.u32.totalorder %s1654_s27, %s2070_s2 }
   0x8   :  { %p1660_p2 = pnand %p1658_p1, %p1655_p0 }
   0xa   :  { %1663 = shalt.err (!%p1660_p2)
}
   0xb   :  { %s1664_s14 = scalar_lea.vmem %s33_s22, 32  ;;  %p1669_p4 = scmp.lt.s32.totalorder %s33_s22, %s33_s22 }
   0xc   :  { %p1665_p3 = scmp.ne.s32.totalorder %s33_s22, %s1664_s14  ;;  %p1670_p5 = scmp.lt.s32.totalorder %s1664_s14, %s1664_s14 }
   0xe   :  { %p1671_p6 = por %p1670_p5, %p1669_p4 }
  0x10   :  { %p1672_p7 = pnand %p1671_p6, %p1665_p3 }
  0x12   :  { %1675 = shalt.err (!%p1672_p7)
}
  0x13   :  { %35 = dma.hbm_to_vmem [thread:$0]  %s2070_s2, 32, %s33_s22, [#allocation4]  }
  0x14   :  { %s1676_s19 = scalar_lea.hbm %s2071_s3, 64 }
  0x15   :  { %p1677_p8 = scmp.ne.s32.totalorder %s2071_s3, %s1676_s19  ;;  %p1680_p9 = scmp.lt.u32.totalorder %s1676_s19, %s2071_s3 }
  0x17   :  { %p1682_p10 = pnand %p1680_p9, %p1677_p8 }
  0x19   :  { %1685 = shalt.err (!%p1682_p10)
}
  0x1a   :  { %s1686_s26 = scalar_lea.vmem %s43_s24, 64  ;;  %p1691_p12 = scmp.lt.s32.totalorder %s43_s24, %s43_s24 }
  0x1b   :  { %p1687_p11 = scmp.ne.s32.totalorder %s43_s24, %s1686_s26  ;;  %p1692_p13 = scmp.lt.s32.totalorder %s1686_s26, %s1686_s26 }
  0x1d   :  { %p1693_p0 = por %p1692_p13, %p1691_p12 }
  0x1f   :  { %p1694_p1 = pnand %p1693_p0, %p1687_p11 }
  0x21   :  { %1697 = shalt.err (!%p1694_p1)
}
  0x22   :  { %45 = dma.hbm_to_vmem [thread:$0]  %s2071_s3, 64, %s43_s24, [#allocation7]  }
  0x23   :  { %1742 = dma.done.wait [#allocation4], 32  }
  0x24   :  { %1743 = vsyncadd [#allocation4], 4294967264 }
  0x25   :  { %1744 = dma.done.wait [#allocation7], 64  }
  0x26   :  { %1745 = vsyncadd [#allocation7], 4294967232  ;;  %vm81_vm0 = vcmask 1042432   ;;  %vm74_vm1 = vcmask 23552   ;;  %v66_v0 = vld [vmem:[#allocation6] sm:$0x7] }
  0x27   :  { %v64_v1 = vld [vmem:[%s2068_s0] sm:$0xff]  ;;  %v65_v2 = vld [vmem:[%s2068_s0 + $0x8] sm:$0xff]  ;;  %1391 = vmatprep.subr.msk.mxu0 %vm81_vm0, %v66_v0  ;;  %v164_v6 = vld [vmem:[%s2073_s5 + $0x10] sm:$0xff]  ;;  %v1752_v12 = vmov 0.0|0.0   ;;  %vm1753_vm2 = vmmov 0   ;;  %v1754_v16 = vmov 0.0  }
  0x28   :  { %1393 = vmatprep.mubr.msk.f32.mxu0 %vm74_vm1, %v64_v1  ;;  %v162_v3 = vld [vmem:[%s2073_s5] sm:$0xff]  ;;  %v163_v4 = vld [vmem:[%s2073_s5 + $0x8] sm:$0xff]  ;;  %1392 = vmatpush3.msk.msra.mxu0 %vm81_vm0, %v66_v0  ;;  %v165_v7 = vld [vmem:[%s2073_s5 + $0x18] sm:$0xff]  ;;  %vm173_vm3 = vcmask 261120   ;;  %vm264_vm4 = vcmask 1041409   ;;  %s1756_s28 = smov 32  }
  0x29   :  { %v1506_v5 = vpack.c.bf16 %v163_v4, %v162_v3  ;;  %1394 = vmatmul.mubr.msk.f32.vlgmr.msra.gmra.mrb[0].mxu0 %vm74_vm1, %v65_v2  ;;  %v1510_v8 = vpack.c.bf16 %v165_v7, %v164_v6  ;;  %v257_v9 = vld [vmem:[%s2074_s6] sm:$0xff]  ;;  %v258_v10 = vld [vmem:[%s2074_s6 + $0x8] sm:$0xff]  ;;  %1514 = vmatprep.subr.bf16.mxu0 %v1752_v12  ;;  %v259_v13 = vld [vmem:[%s2074_s6 + $0x10] sm:$0xff]  ;;  %vm372_vm5 = vcmask 254976   ;;  %s1758_s18 = smov 96   ;;  %s1760_s20 = smov [#allocation9]  }
  0x2a   :  { %v1875_v11 = vpack.c.bf16 %v258_v10, %v257_v9  ;;  %v260_v14 = vld [vmem:[%s2074_s6 + $0x18] sm:$0xff]  ;;  %1415 = vmatprep.mubr.msk.f32.mxu0 %vm1753_vm2, %v1754_v16  ;;  %v255_v17 = vld [vmem:[%s2069_s1] sm:$0x3]  ;;  %v256_v56 = vld [vmem:[#allocation3] sm:$0x3]  ;;  %s1292_s21 = sshll.u32 %s1760_s20, 4  ;;  %s1293_s21 = int_to_ptr.vmem [resolvable:$true] %s1292_s21 }
  0x2b   :  { %1507 = vmatprep.subr.bf16.mxu1 %v1506_v5  ;;  %v1887_v15 = vpack.c.bf16 %v260_v14, %v259_v13  ;;  %v1308_v18 = vld [vmem:[%s2072_s4] ss:$0 sm:$0xff] }
  0x2c   :  { %1509 = vmatpush3.bf16.msra.mxu1 %v1506_v5  ;;  %1516 = vmatpush3.bf16.msra.mxu0 %v1875_v11  ;;  %v1312_v27 = vld [vmem:[%s2075_s7] ss:$0 sm:$0xff]  ;;  %s1755_s7 = smov 64  }
  0x2d   :  { %1511 = vmatprep.subr.bf16.mxu1 %v1510_v8  ;;  %1517 = vmatprep.subr.bf16.mxu0 %v1752_v12 }
  0x30   :  { %1513 = vmatpush3.bf16.msra.mxu1 %v1510_v8  ;;  %1519 = vmatpush3.bf16.msra.mxu0 %v1887_v15 }
  0x31   :  { %1520 = vmatprep.subr.bf16.mxu1 %v1752_v12  ;;  %1526 = vmatprep.subr.bf16.mxu0 %v1752_v12 }
  0x33   :  { %1416 = vmatmul.mubr.msk.f32.vlgmr.msra.gmra.mrb[2].mxu0 %vm173_vm3, %v255_v17 }
  0x34   :  { %1528 = vmatpush3.bf16.msra.mxu0 %v1875_v11  ;;  %1437 = vmatprep.mubr.msk.f32.mxu0 %vm1753_vm2, %v1754_v16 }
  0x35   :  { %1529 = vmatprep.subr.bf16.mxu0 %v1752_v12 }
  0x38   :  { %1531 = vmatpush3.bf16.msra.mxu0 %v1887_v15 }
  0x39   :  { %1538 = vmatprep.subr.bf16.mxu0 %v1752_v12 }
  0xfc   :  { %v1395_v19 = vpop.f32.mrb[0].mxu0 }
  0xfd   :  { %v157_v20 = vadd.f32 %v1395_v19, %v1308_v18  ;;  %v151_v21 = vpop.f32.mrb[1].mxu0 }
  0xfe   :  { %v152_v22 = vadd.f32 %v1308_v18, %v151_v21 }
  0xff   :  { %v161_v24 = vmax.f32 %v157_v20, 0.0 }
 0x100   :  { %v160_v23 = vmax.f32 %v152_v22, 0.0 }
 0x102   :  { %1404 = vmatprep.mubr.msk.f32.mxu1 %vm173_vm3, %v160_v23 }
 0x103   :  { %1405 = vmatmul.mubr.msk.f32.vlgmr.msra.gmra.mrb[0].mxu1 %vm173_vm3, %v161_v24 }
 0x104   :  { %1522 = vmatpush3.bf16.msra.mxu1 %v1875_v11  ;;  %1426 = vmatprep.mubr.msk.f32.mxu1 %vm1753_vm2, %v1754_v16 }
 0x105   :  { %1523 = vmatprep.subr.bf16.mxu1 %v1752_v12 }
 0x106   :  { %v336_v25 = vpop.f32.mrb[2].mxu0 }
 0x107   :  { %v1417_v26 = vpop.f32.mrb[3].mxu0 }
 0x108   :  { %1525 = vmatpush3.bf16.msra.mxu1 %v1887_v15 }
 0x109   :  { %1532 = vmatprep.subr.bf16.mxu1 %v1752_v12 }
 0x1d6   :  { %v1406_v28 = vpop.f32.mrb[0].mxu1 }
 0x1d7   :  { %v252_v29 = vadd.f32 %v1406_v28, %v1312_v27  ;;  %v246_v30 = vpop.f32.mrb[1].mxu1 }
 0x1d8   :  { %v247_v31 = vadd.f32 %v1312_v27, %v246_v30 }
 0x1d9   :  { %v263_v32 = vrot.slane %v252_v29, 7  ;;  %v487_v33 = vrot.slane %v252_v29, 1  ;;  %v596_v34 = vrot.slane %v252_v29, 2  ;;  %v705_v35 = vrot.slane %v252_v29, 3 }
 0x1da   :  { %v378_v36 = vrot.slane %v247_v31, 1  ;;  %v486_v37 = vrot.slane %v247_v31, 2  ;;  %v595_v38 = vrot.slane %v247_v31, 3  ;;  %v704_v39 = vrot.slane %v247_v31, 4 }
 0x1db   :  { %v265_v40 = vsel %vm264_vm4, %v263_v32, %v247_v31  ;;  %v813_v41 = vrot.slane %v247_v31, 5  ;;  %v814_v42 = vrot.slane %v252_v29, 4  ;;  %v922_v43 = vrot.slane %v247_v31, 6 }
 0x1dc   :  { %v337_v44 = vadd.f32 %v336_v25, %v265_v40  ;;  %v379_v45 = vsel %vm264_vm4, %v252_v29, %v378_v36  ;;  %v1920_v46 = vsel %vm264_vm4, %v487_v33, %v486_v37  ;;  %v1923_v47 = vsel %vm264_vm4, %v596_v34, %v595_v38 }
 0x1dd   :  { %v1926_v48 = vsel %vm264_vm4, %v705_v35, %v704_v39  ;;  %v1929_v49 = vsel %vm264_vm4, %v814_v42, %v813_v41  ;;  %v923_v50 = vrot.slane %v252_v29, 5  ;;  %v1031_v51 = vrot.slane %v247_v31, 7 }
 0x1de   :  { %1582 = vtanh.f32 %v337_v44  ;;  %v1032_v52 = vrot.slane %v252_v29, 6  ;;  %v1316_v57 = vmul.f32 -1.442695, %v337_v44 }
 0x1df   :  { %v1932_v53 = vsel %vm264_vm4, %v923_v50, %v922_v43 }
 0x1e0   :  { %v1935_v54 = vsel %vm264_vm4, %v1032_v52, %v1031_v51  ;;  %1584 = vpow2.f32 %v1316_v57 }
 0x1e8   :  { %v1583_v55 = vpop.eup %1582 }
 0x1e9   :  { %353 = vrot.lane.b32.xlu0 %v1583_v55, %s1755_s7 }
 0x1ea   :  { %v1585_v58 = vpop.eup %1584 }
 0x1eb   :  { %v343_v59 = vadd.f32 1.0, %v1585_v58 }
 0x1ed   :  { %348 = vrot.lane.b32.xlu0 %v256_v56, %s1756_s28  ;;  %1586 = vrcp.f32 %v343_v59 }
 0x1f7   :  { %v1587_v60 = vpop.eup %1586 }
 0x25b   :  { %v354_v61 = vpop.permute.xlu0 %353 }
 0x25c   :  { %v356_v62 = vmul.f32 %v1587_v60, %v354_v61 }
 0x25e   :  { %358 = vrot.lane.b32.xlu1 %v356_v62, %s1756_s28 }
 0x25f   :  { %v349_v63 = vpop.permute.xlu0 %348 }
 0x260   :  { %v351_v0 = vmul.f32 %v1587_v60, %v349_v63 }
 0x2d0   :  { %v359_v1 = vpop.permute.xlu1 %358 }
 0x2d1   :  { %v361_v2 = vadd.f32 %v359_v1, %v351_v0 }
 0x2d3   :  { %1588 = vtanh.f32 %v361_v2 }
 0x2dd   :  { %v1589_v3 = vpop.eup %1588 }
 0x2de   :  { %364 = vrot.lane.b32.xlu1 %v1589_v3, %s1755_s7 }
 0x350   :  { %v365_v4 = vpop.permute.xlu1 %364 }
 0x351   :  { %v367_v5 = vmul.f32 %v1587_v60, %v365_v4 }
 0x353   :  { %369 = vrot.lane.b32.xlu0 %v367_v5, %s1756_s28 }
 0x3c5   :  { %v370_v6 = vpop.permute.xlu0 %369 }
 0x3c6   :  { %373 = vst.msk [vmem:[#allocation2] sm:$0x3] %vm372_vm5, %v370_v6  ;;  %1427 = vmatmul.mubr.msk.f32.vlgmr.msra.gmra.mrb[2].mxu1 %vm173_vm3, %v370_v6 }
 0x3c7   :  { %1534 = vmatpush3.bf16.msra.mxu1 %v1875_v11  ;;  %1448 = vmatprep.mubr.msk.f32.mxu1 %vm1753_vm2, %v1754_v16 }
 0x3c8   :  { %1535 = vmatprep.subr.bf16.mxu1 %v1752_v12 }
 0x3cb   :  { %1537 = vmatpush3.bf16.msra.mxu1 %v1887_v15 }
 0x3cc   :  { %1544 = vmatprep.subr.bf16.mxu1 %v1752_v12 }
 0x499   :  { %v449_v7 = vpop.f32.mrb[2].mxu1 }
 0x49a   :  { %v450_v8 = vadd.f32 %v449_v7, %v379_v45  ;;  %v1428_v9 = vpop.f32.mrb[3].mxu1 }
 0x49c   :  { %1590 = vtanh.f32 %v450_v8  ;;  %v1318_v13 = vmul.f32 -1.442695, %v450_v8 }
 0x49e   :  { %1592 = vpow2.f32 %v1318_v13 }
 0x4a6   :  { %v1591_v10 = vpop.eup %1590 }
 0x4a7   :  { %462 = vrot.lane.b32.xlu1 %v1591_v10, %s1755_s7 }
 0x4a8   :  { %v1593_v14 = vpop.eup %1592 }
 0x4a9   :  { %v456_v17 = vadd.f32 1.0, %v1593_v14 }
 0x4ab   :  { %1594 = vrcp.f32 %v456_v17 }
 0x4b5   :  { %v1595_v18 = vpop.eup %1594 }
 0x4b6   :  { %v460_v21 = vmul.f32 %v1595_v18, %v361_v2 }
 0x519   :  { %v463_v19 = vpop.permute.xlu1 %462 }
 0x51a   :  { %v465_v20 = vmul.f32 %v1595_v18, %v463_v19 }
 0x51c   :  { %467 = vrot.lane.b32.xlu0 %v465_v20, %s1756_s28 }
 0x58e   :  { %v468_v22 = vpop.permute.xlu0 %467 }
 0x58f   :  { %v470_v23 = vadd.f32 %v468_v22, %v460_v21 }
 0x591   :  { %1596 = vtanh.f32 %v470_v23 }
 0x59b   :  { %v1597_v24 = vpop.eup %1596 }
 0x59c   :  { %473 = vrot.lane.b32.xlu1 %v1597_v24, %s1755_s7 }
 0x60e   :  { %v474_v25 = vpop.permute.xlu1 %473 }
 0x60f   :  { %v476_v26 = vmul.f32 %v1595_v18, %v474_v25 }
 0x611   :  { %478 = vrot.lane.b32.xlu0 %v476_v26, %s1756_s28 }
 0x683   :  { %v479_v27 = vpop.permute.xlu0 %478 }
 0x684   :  { %481 = vst.msk [vmem:[#allocation2 + $0x2] sm:$0x3] %vm372_vm5, %v479_v27  ;;  %1438 = vmatmul.mubr.msk.f32.vlgmr.msra.gmra.mrb[4].mxu0 %vm173_vm3, %v479_v27 }
 0x685   :  { %1540 = vmatpush3.bf16.msra.mxu0 %v1875_v11  ;;  %1459 = vmatprep.mubr.msk.f32.mxu0 %vm1753_vm2, %v1754_v16 }
 0x686   :  { %1541 = vmatprep.subr.bf16.mxu0 %v1752_v12 }
 0x689   :  { %1543 = vmatpush3.bf16.msra.mxu0 %v1887_v15 }
 0x68a   :  { %1550 = vmatprep.subr.bf16.mxu0 %v1752_v12 }
 0x757   :  { %v558_v28 = vpop.f32.mrb[4].mxu0 }
 0x758   :  { %v559_v29 = vadd.f32 %v558_v28, %v1920_v46  ;;  %v1439_v30 = vpop.f32.mrb[5].mxu0 }
 0x75a   :  { %1598 = vtanh.f32 %v559_v29  ;;  %v1320_v32 = vmul.f32 -1.442695, %v559_v29 }
 0x75c   :  { %1600 = vpow2.f32 %v1320_v32 }
 0x764   :  { %v1599_v31 = vpop.eup %1598 }
 0x765   :  { %571 = vrot.lane.b32.xlu1 %v1599_v31, %s1755_s7 }
 0x766   :  { %v1601_v33 = vpop.eup %1600 }
 0x767   :  { %v565_v34 = vadd.f32 1.0, %v1601_v33 }
 0x769   :  { %1602 = vrcp.f32 %v565_v34 }
 0x773   :  { %v1603_v35 = vpop.eup %1602 }
 0x774   :  { %v569_v38 = vmul.f32 %v1603_v35, %v470_v23 }
 0x7d7   :  { %v572_v36 = vpop.permute.xlu1 %571 }
 0x7d8   :  { %v574_v37 = vmul.f32 %v1603_v35, %v572_v36 }
 0x7da   :  { %576 = vrot.lane.b32.xlu0 %v574_v37, %s1756_s28 }
 0x84c   :  { %v577_v39 = vpop.permute.xlu0 %576 }
 0x84d   :  { %v579_v40 = vadd.f32 %v577_v39, %v569_v38 }
 0x84f   :  { %1604 = vtanh.f32 %v579_v40 }
 0x859   :  { %v1605_v41 = vpop.eup %1604 }
 0x85a   :  { %582 = vrot.lane.b32.xlu1 %v1605_v41, %s1755_s7 }
 0x8cc   :  { %v583_v42 = vpop.permute.xlu1 %582 }
 0x8cd   :  { %v585_v43 = vmul.f32 %v1603_v35, %v583_v42 }
 0x8cf   :  { %587 = vrot.lane.b32.xlu0 %v585_v43, %s1756_s28 }
 0x941   :  { %v588_v44 = vpop.permute.xlu0 %587 }
 0x942   :  { %590 = vst.msk [vmem:[#allocation2 + $0x4] sm:$0x3] %vm372_vm5, %v588_v44  ;;  %1449 = vmatmul.mubr.msk.f32.vlgmr.msra.gmra.mrb[4].mxu1 %vm173_vm3, %v588_v44 }
 0x943   :  { %1546 = vmatpush3.bf16.msra.mxu1 %v1875_v11  ;;  %1470 = vmatprep.mubr.msk.f32.mxu1 %vm1753_vm2, %v1754_v16 }
 0x944   :  { %1547 = vmatprep.subr.bf16.mxu1 %v1752_v12 }
 0x947   :  { %1549 = vmatpush3.bf16.msra.mxu1 %v1887_v15 }
 0x948   :  { %1556 = vmatprep.subr.bf16.mxu1 %v1752_v12 }
 0xa15   :  { %v667_v45 = vpop.f32.mrb[4].mxu1 }
 0xa16   :  { %v668_v46 = vadd.f32 %v667_v45, %v1923_v47  ;;  %v1450_v50 = vpop.f32.mrb[5].mxu1 }
 0xa18   :  { %1606 = vtanh.f32 %v668_v46  ;;  %v1322_v52 = vmul.f32 -1.442695, %v668_v46 }
 0xa1a   :  { %1608 = vpow2.f32 %v1322_v52 }
 0xa22   :  { %v1607_v51 = vpop.eup %1606 }
 0xa23   :  { %680 = vrot.lane.b32.xlu1 %v1607_v51, %s1755_s7 }
 0xa24   :  { %v1609_v55 = vpop.eup %1608 }
 0xa25   :  { %v674_v56 = vadd.f32 1.0, %v1609_v55 }
 0xa27   :  { %1610 = vrcp.f32 %v674_v56 }
 0xa31   :  { %v1611_v57 = vpop.eup %1610 }
 0xa32   :  { %v678_v60 = vmul.f32 %v1611_v57, %v579_v40 }
 0xa95   :  { %v681_v58 = vpop.permute.xlu1 %680 }
 0xa96   :  { %v683_v59 = vmul.f32 %v1611_v57, %v681_v58 }
 0xa98   :  { %685 = vrot.lane.b32.xlu0 %v683_v59, %s1756_s28 }
 0xb0a   :  { %v686_v61 = vpop.permute.xlu0 %685 }
 0xb0b   :  { %v688_v62 = vadd.f32 %v686_v61, %v678_v60 }
 0xb0d   :  { %1612 = vtanh.f32 %v688_v62 }
 0xb17   :  { %v1613_v47 = vpop.eup %1612 }
 0xb18   :  { %691 = vrot.lane.b32.xlu1 %v1613_v47, %s1755_s7 }
 0xb8a   :  { %v692_v63 = vpop.permute.xlu1 %691 }
 0xb8b   :  { %v694_v0 = vmul.f32 %v1611_v57, %v692_v63 }
 0xb8d   :  { %696 = vrot.lane.b32.xlu0 %v694_v0, %s1756_s28 }
 0xbff   :  { %v697_v1 = vpop.permute.xlu0 %696 }
 0xc00   :  { %699 = vst.msk [vmem:[#allocation2 + $0x6] sm:$0x3] %vm372_vm5, %v697_v1  ;;  %1460 = vmatmul.mubr.msk.f32.vlgmr.msra.gmra.mrb[6].mxu0 %vm173_vm3, %v697_v1 }
 0xc01   :  { %1552 = vmatpush3.bf16.msra.mxu0 %v1875_v11  ;;  %1481 = vmatprep.mubr.msk.f32.mxu0 %vm1753_vm2, %v1754_v16 }
 0xc02   :  { %1553 = vmatprep.subr.bf16.mxu0 %v1752_v12 }
 0xc05   :  { %1555 = vmatpush3.bf16.msra.mxu0 %v1887_v15 }
 0xc07   :  { %v1142_v34 = vld [vmem:[#allocation2] sm:$0xff] }
 0xcd3   :  { %v776_v2 = vpop.f32.mrb[6].mxu0 }
 0xcd4   :  { %v777_v3 = vadd.f32 %v776_v2, %v1926_v48  ;;  %v1461_v4 = vpop.f32.mrb[7].mxu0 }
 0xcd5   :  { %v1144_v4 = vld [vmem:[%s2076_s8] sm:$0xff] }
 0xcd6   :  { %1614 = vtanh.f32 %v777_v3  ;;  %v1324_v6 = vmul.f32 -1.442695, %v777_v3 }
 0xcd8   :  { %1616 = vpow2.f32 %v1324_v6  ;;  %v1146_v6 = vld [vmem:[%s2076_s8 + $0x10] sm:$0xff] }
 0xce0   :  { %v1615_v5 = vpop.eup %1614 }
 0xce1   :  { %789 = vrot.lane.b32.xlu1 %v1615_v5, %s1755_s7  ;;  %v1145_v5 = vld [vmem:[%s2076_s8 + $0x8] sm:$0xff] }
 0xce2   :  { %v1617_v7 = vpop.eup %1616 }
 0xce3   :  { %v783_v8 = vadd.f32 1.0, %v1617_v7  ;;  %v1562_v7 = vpack.c.bf16 %v1145_v5, %v1144_v4 }
 0xce5   :  { %1618 = vrcp.f32 %v783_v8  ;;  %v1147_v8 = vld [vmem:[%s2076_s8 + $0x18] sm:$0xff]  ;;  %1563 = vmatprep.subr.bf16.mxu0 %v1562_v7  ;;  %s1757_s8 = smov 1  }
 0xcef   :  { %v1619_v9 = vpop.eup %1618 }
 0xcf0   :  { %v787_v14 = vmul.f32 %v1619_v9, %v688_v62 }
 0xd53   :  { %v790_v10 = vpop.permute.xlu1 %789 }
 0xd54   :  { %v792_v13 = vmul.f32 %v1619_v9, %v790_v10 }
 0xd56   :  { %794 = vrot.lane.b32.xlu0 %v792_v13, %s1756_s28 }
 0xdc8   :  { %v795_v17 = vpop.permute.xlu0 %794 }
 0xdc9   :  { %v797_v18 = vadd.f32 %v795_v17, %v787_v14 }
 0xdcb   :  { %1620 = vtanh.f32 %v797_v18 }
 0xdd5   :  { %v1621_v48 = vpop.eup %1620 }
 0xdd6   :  { %800 = vrot.lane.b32.xlu1 %v1621_v48, %s1755_s7 }
 0xe48   :  { %v801_v19 = vpop.permute.xlu1 %800 }
 0xe49   :  { %v803_v20 = vmul.f32 %v1619_v9, %v801_v19  ;;  %v1566_v9 = vpack.c.bf16 %v1147_v8, %v1146_v6 }
 0xe4b   :  { %805 = vrot.lane.b32.xlu0 %v803_v20, %s1756_s28 }
 0xebd   :  { %v806_v21 = vpop.permute.xlu0 %805 }
 0xebe   :  { %808 = vst.msk [vmem:[#allocation2 + $0x8] sm:$0x3] %vm372_vm5, %v806_v21  ;;  %1471 = vmatmul.mubr.msk.f32.vlgmr.msra.gmra.mrb[6].mxu1 %vm173_vm3, %v806_v21 }
 0xebf   :  { %1558 = vmatpush3.bf16.msra.mxu1 %v1875_v11  ;;  %1492 = vmatprep.mubr.msk.f32.mxu1 %vm1753_vm2, %v1754_v16 }
 0xec0   :  { %1559 = vmatprep.subr.bf16.mxu1 %v1752_v12 }
 0xec3   :  { %1561 = vmatpush3.bf16.msra.mxu1 %v1887_v15 }
 0xf91   :  { %v885_v22 = vpop.f32.mrb[6].mxu1 }
 0xf92   :  { %v886_v23 = vadd.f32 %v885_v22, %v1929_v49  ;;  %v1472_v24 = vpop.f32.mrb[7].mxu1 }
 0xf94   :  { %1622 = vtanh.f32 %v886_v23  ;;  %v1326_v26 = vmul.f32 -1.442695, %v886_v23 }
 0xf96   :  { %1624 = vpow2.f32 %v1326_v26 }
 0xf9e   :  { %v1623_v25 = vpop.eup %1622 }
 0xf9f   :  { %898 = vrot.lane.b32.xlu1 %v1623_v25, %s1755_s7 }
 0xfa0   :  { %v1625_v27 = vpop.eup %1624 }
 0xfa1   :  { %v892_v28 = vadd.f32 1.0, %v1625_v27 }
 0xfa3   :  { %1626 = vrcp.f32 %v892_v28 }
 0xfad   :  { %v1627_v11 = vpop.eup %1626 }
 0xfae   :  { %v896_v12 = vmul.f32 %v1627_v11, %v797_v18  ;;  %v1331_v18 = vld [vmem:[%s2077_s9] ss:$0 sm:$0xff]  ;;  %s1759_s9 = smov [#allocation8]  }
 0xfaf   :  { %s1282_s19 = sshll.u32 %s1759_s9, 4  ;;  %s1283_s19 = int_to_ptr.vmem [resolvable:$true] %s1282_s19 }
 0xfb0   :  { %s1698_s5 = scalar_lea.vmem %s1283_s19, 32  ;;  %p1703_p3 = scmp.lt.s32.totalorder %s1283_s19, %s1283_s19 }
 0xfb1   :  { %p1699_p2 = scmp.ne.s32.totalorder %s1283_s19, %s1698_s5  ;;  %p1704_p4 = scmp.lt.s32.totalorder %s1698_s5, %s1698_s5 }
 0xfb3   :  { %p1705_p5 = por %p1704_p4, %p1703_p3 }
 0xfb5   :  { %p1706_p6 = pnand %p1705_p5, %p1699_p2 }
0x1011   :  { %v899_v29 = vpop.permute.xlu1 %898 }
0x1012   :  { %v901_v16 = vmul.f32 %v1627_v11, %v899_v29 }
0x1014   :  { %903 = vrot.lane.b32.xlu0 %v901_v16, %s1756_s28 }
0x1086   :  { %v904_v15 = vpop.permute.xlu0 %903 }
0x1087   :  { %v906_v30 = vadd.f32 %v904_v15, %v896_v12 }
0x1089   :  { %1628 = vtanh.f32 %v906_v30 }
0x1093   :  { %v1629_v49 = vpop.eup %1628 }
0x1094   :  { %909 = vrot.lane.b32.xlu1 %v1629_v49, %s1755_s7 }
0x1106   :  { %v910_v31 = vpop.permute.xlu1 %909 }
0x1107   :  { %v912_v32 = vmul.f32 %v1627_v11, %v910_v31 }
0x1109   :  { %914 = vrot.lane.b32.xlu0 %v912_v32, %s1756_s28 }
0x117b   :  { %v915_v33 = vpop.permute.xlu0 %914 }
0x117c   :  { %917 = vst.msk [vmem:[#allocation2 + $0xa] sm:$0x3] %vm372_vm5, %v915_v33  ;;  %1482 = vmatmul.mubr.msk.f32.vlgmr.msra.gmra.mrb[8].mxu0 %vm173_vm3, %v915_v33 }
0x117d   :  { %1503 = vmatprep.mubr.msk.f32.mxu0 %vm173_vm3, %v1142_v34  ;;  %1565 = vmatpush3.bf16.msra.mxu0 %v1562_v7 }
0x117e   :  { %1567 = vmatprep.subr.bf16.mxu0 %v1566_v9 }
0x1181   :  { %1569 = vmatpush3.bf16.msra.mxu0 %v1566_v9 }
0x124f   :  { %v994_v35 = vpop.f32.mrb[8].mxu0 }
0x1250   :  { %v995_v36 = vadd.f32 %v994_v35, %v1932_v53  ;;  %v1483_v37 = vpop.f32.mrb[9].mxu0 }
0x1252   :  { %1630 = vtanh.f32 %v995_v36  ;;  %v1328_v39 = vmul.f32 -1.442695, %v995_v36 }
0x1254   :  { %1632 = vpow2.f32 %v1328_v39 }
0x125c   :  { %v1631_v38 = vpop.eup %1630 }
0x125d   :  { %1007 = vrot.lane.b32.xlu1 %v1631_v38, %s1755_s7 }
0x125e   :  { %v1633_v40 = vpop.eup %1632 }
0x125f   :  { %v1001_v41 = vadd.f32 1.0, %v1633_v40 }
0x1261   :  { %1634 = vrcp.f32 %v1001_v41 }
0x126b   :  { %v1635_v42 = vpop.eup %1634 }
0x126c   :  { %v1005_v45 = vmul.f32 %v1635_v42, %v906_v30 }
0x12cf   :  { %v1008_v43 = vpop.permute.xlu1 %1007 }
0x12d0   :  { %v1010_v44 = vmul.f32 %v1635_v42, %v1008_v43 }
0x12d2   :  { %1012 = vrot.lane.b32.xlu0 %v1010_v44, %s1756_s28 }
0x1344   :  { %v1013_v46 = vpop.permute.xlu0 %1012 }
0x1345   :  { %v1015_v50 = vadd.f32 %v1013_v46, %v1005_v45 }
0x1347   :  { %1636 = vtanh.f32 %v1015_v50 }
0x1351   :  { %v1637_v53 = vpop.eup %1636 }
0x1352   :  { %1018 = vrot.lane.b32.xlu1 %v1637_v53, %s1755_s7 }
0x13c4   :  { %v1019_v51 = vpop.permute.xlu1 %1018 }
0x13c5   :  { %v1021_v52 = vmul.f32 %v1635_v42, %v1019_v51 }
0x13c7   :  { %1023 = vrot.lane.b32.xlu0 %v1021_v52, %s1756_s28 }
0x1439   :  { %v1024_v55 = vpop.permute.xlu0 %1023 }
0x143a   :  { %1026 = vst.msk [vmem:[#allocation2 + $0xc] sm:$0x3] %vm372_vm5, %v1024_v55  ;;  %1493 = vmatmul.mubr.msk.f32.vlgmr.msra.gmra.mrb[8].mxu1 %vm173_vm3, %v1024_v55 }
0x150d   :  { %v1103_v56 = vpop.f32.mrb[8].mxu1 }
0x150e   :  { %v1104_v57 = vadd.f32 %v1103_v56, %v1935_v54  ;;  %v1494_v58 = vpop.f32.mrb[9].mxu1 }
0x1510   :  { %1638 = vtanh.f32 %v1104_v57  ;;  %v1330_v60 = vmul.f32 -1.442695, %v1104_v57 }
0x1512   :  { %1640 = vpow2.f32 %v1330_v60 }
0x151a   :  { %v1639_v59 = vpop.eup %1638 }
0x151b   :  { %1116 = vrot.lane.b32.xlu1 %v1639_v59, %s1755_s7 }
0x151c   :  { %v1641_v61 = vpop.eup %1640 }
0x151d   :  { %v1110_v62 = vadd.f32 1.0, %v1641_v61 }
0x151f   :  { %1642 = vrcp.f32 %v1110_v62 }
0x1529   :  { %v1643_v47 = vpop.eup %1642 }
0x152a   :  { %v1114_v1 = vmul.f32 %v1643_v47, %v1015_v50 }
0x158d   :  { %v1117_v63 = vpop.permute.xlu1 %1116 }
0x158e   :  { %v1119_v0 = vmul.f32 %v1643_v47, %v1117_v63 }
0x1590   :  { %1121 = vrot.lane.b32.xlu0 %v1119_v0, %s1756_s28 }
0x1602   :  { %v1122_v2 = vpop.permute.xlu0 %1121 }
0x1603   :  { %v1124_v3 = vadd.f32 %v1122_v2, %v1114_v1 }
0x1605   :  { %1644 = vtanh.f32 %v1124_v3 }
0x160f   :  { %v1645_v54 = vpop.eup %1644 }
0x1610   :  { %1127 = vrot.lane.b32.xlu1 %v1645_v54, %s1755_s7 }
0x1682   :  { %v1128_v10 = vpop.permute.xlu1 %1127 }
0x1683   :  { %v1130_v13 = vmul.f32 %v1643_v47, %v1128_v10 }
0x1685   :  { %1132 = vrot.lane.b32.xlu0 %v1130_v13, %s1756_s28 }
0x16f7   :  { %v1133_v14 = vpop.permute.xlu0 %1132 }
0x16f8   :  { %1135 = vst.msk [vmem:[#allocation2 + $0xe] sm:$0x3] %vm372_vm5, %v1133_v14  ;;  %1136 = vst.msk [vmem:[#allocation8] sm:$0x3] %vm372_vm5, %v1133_v14 }
0x16ff   :  { %v1143_v17 = vld [vmem:[#allocation2 + $0x8] sm:$0xff] }
0x1700   :  { %1504 = vmatmul.mubr.msk.f32.vlgmr.msra.gmra.mrb[10].mxu0 %vm173_vm3, %v1143_v17 }
0x17d3   :  { %v1505_v48 = vpop.f32.mrb[10].mxu0 }
0x17d4   :  { %v1233_v19 = vadd.f32 %v1505_v48, %v1331_v18  ;;  %v1227_v20 = vpop.f32.mrb[11].mxu0 }
0x17d5   :  { %v1228_v21 = vadd.f32 %v1331_v18, %v1227_v20 }
0x17d6   :  { %1240 = vrot.lane.b32.xlu0 %v1233_v19, %s1757_s8 }
0x17d7   :  { %1238 = vrot.lane.b32.xlu1 %v1228_v21, %s1757_s8 }
0x17db   :  { %1138 = vrot.lane.b32.xlu1 %v1124_v3, %s1758_s18 }
0x1848   :  { %v1241_v22 = vpop.permute.xlu0 %1240 }
0x1849   :  { %v1245_v23 = vsub.f32 %v1233_v19, %v1241_v22  ;;  %v1239_v24 = vpop.permute.xlu1 %1238 }
0x184a   :  { %v1244_v25 = vsub.f32 %v1228_v21, %v1239_v24 }
0x184b   :  { %v1335_v26 = vmul.f32 -1.442695, %v1245_v23 }
0x184c   :  { %v1334_v27 = vmul.f32 -1.442695, %v1244_v25 }
0x184d   :  { %1646 = vpow2.f32 %v1335_v26  ;;  %v1139_v28 = vpop.permute.xlu1 %1138 }
0x184e   :  { %1648 = vpow2.f32 %v1334_v27  ;;  %1141 = vst.msk [vmem:[#allocation9] sm:$0x3] %vm372_vm5, %v1139_v28 }
0x1857   :  { %v1647_v11 = vpop.eup %1646 }
0x1858   :  { %v1649_v29 = vpop.eup %1648  ;;  %v1253_v16 = vadd.f32 1.0, %v1647_v11 }
0x1859   :  { %v1252_v12 = vadd.f32 1.0, %v1649_v29 }
0x185a   :  { %1650 = vrcp.f32 %v1253_v16 }
0x185b   :  { %1652 = vrcp.f32 %v1252_v12 }
0x185c   :  { %1709 = shalt.err (!%p1706_p6)
}
0x185d   :  { %s1710_s26 = scalar_lea.hbm %s2079_s11, 32 }
0x185e   :  { %p1711_p7 = scmp.ne.s32.totalorder %s2079_s11, %s1710_s26  ;;  %p1714_p8 = scmp.lt.u32.totalorder %s1710_s26, %s2079_s11 }
0x1860   :  { %p1716_p9 = pnand %p1714_p8, %p1711_p7 }
0x1862   :  { %1719 = shalt.err (!%p1716_p9)
}
0x1863   :  { %1285 = dma.vmem_to_hbm [thread:$0]  %s1283_s19, 32, %s2079_s11, [#allocation5]  }
0x1864   :  { %s1720_s7 = scalar_lea.vmem %s1293_s21, 32  ;;  %p1725_p11 = scmp.lt.s32.totalorder %s1293_s21, %s1293_s21 }
0x1865   :  { %p1721_p10 = scmp.ne.s32.totalorder %s1293_s21, %s1720_s7  ;;  %p1726_p12 = scmp.lt.s32.totalorder %s1720_s7, %s1720_s7 }
0x1867   :  { %p1727_p13 = por %p1726_p12, %p1725_p11 }
0x1869   :  { %p1728_p0 = pnand %p1727_p13, %p1721_p10 }
0x186b   :  { %1731 = shalt.err (!%p1728_p0)
}
0x186c   :  { %s1732_s30 = scalar_lea.hbm %s2080_s12, 32 }
0x186d   :  { %p1733_p1 = scmp.ne.s32.totalorder %s2080_s12, %s1732_s30  ;;  %p1736_p2 = scmp.lt.u32.totalorder %s1732_s30, %s2080_s12 }
0x186f   :  { %p1738_p3 = pnand %p1736_p2, %p1733_p1 }
0x1871   :  { %1741 = shalt.err (!%p1738_p3)
}
0x1872   :  { %1295 = dma.vmem_to_hbm [thread:$0]  %s1293_s21, 32, %s2080_s12, [#allocation10]   ;;  %v1651_v15 = vpop.eup %1650  ;;  %vm1268_vm6 = vcmask 7168   ;;  %vm1271_vm7 = vcmask 15360  }
0x1873   :  { %v1653_v30 = vpop.eup %1652  ;;  %v1259_v49 = vsub.f32 1.0, %v1651_v15  ;;  %s1761_s16 = smov 127  }
0x1874   :  { %v1258_v31 = vsub.f32 1.0, %v1653_v30 }
0x1875   :  { %1264 = vrot.lane.b32.xlu1 %v1259_v49, %s1761_s16 }
0x1876   :  { %1262 = vrot.lane.b32.xlu0 %v1258_v31, %s1761_s16 }
0x18e7   :  { %v1265_v32 = vpop.permute.xlu1 %1264 }
0x18e8   :  { %v1270_v33 = vsel %vm1268_vm6, %v1265_v32, %v1651_v15  ;;  %v1263_v34 = vpop.permute.xlu0 %1262 }
0x18e9   :  { %1273 = vst.msk [vmem:[%s2078_s10 + $0x8] sm:$0xff] %vm1271_vm7, %v1270_v33  ;;  %v1269_v35 = vsel %vm1268_vm6, %v1263_v34, %v1653_v30 }
0x18ea   :  { %1272 = vst.msk [vmem:[%s2078_s10] sm:$0xff] %vm1271_vm7, %v1269_v35 }
0x18eb   :  { %1746 = dma.done.wait [#allocation5], 32  }
0x18ec   :  { %1747 = vsyncadd [#allocation5], 4294967264 }
0x18ed   :  { %1748 = dma.done.wait [#allocation10], 32  }
0x18ee   :  { %1749 = vsyncadd [#allocation10], 4294967264 }
0x18ef   :  { %1304 = vsyncpa [#allocation4], 1 }
0x18f0   :  { %1305 = vsyncpa [#allocation7], 1 }
0x18f1   :  { %1306 = vsyncpa [#allocation5], 1 }
0x18f2   :  { %1307 = vsyncpa [#allocation10], 1 }

</bundles_post_ra>
